<compile_context>
chip_gen: v6e
topology: v6e:2x2x1
jax: 0.10.0
libtpu: 0.0.40
codegen_flags: <defaults>
</compile_context>

<pallas_src>
from functools import partial

import jax
import jax.numpy as jnp
from jax.experimental import pallas as pl
from jax.experimental.pallas import tpu as pltpu  # noqa: F401  (kept for TPU-specific tuning hooks)


# ----------------------------- fused Pallas kernel --------------------------

def _fused_mlp_kernel(*refs, num_layers, no_final_act):
    """refs = (x_ref, w0_ref, b0_ref, w1_ref, b1_ref, ..., o_ref).

    Computes h = x; for each layer: h = relu(h @ W_T + b), with the ReLU on
    the last layer skipped when no_final_act (matching MLPBackbone, where the
    final projection layer drops its activation).
    """
    x_ref, o_ref = refs[0], refs[-1]
    layer_refs = refs[1:-1]

    h = x_ref[...]                                   # (B_pad, obs_dim) f32
    for i in range(num_layers):                      # static unroll: LLO sees all 3 matmuls
        w = layer_refs[2 * i][...]                   # (in_dim, out_dim)
        b = layer_refs[2 * i + 1][...]               # (1, out_dim)
        h = jnp.dot(h, w, preferred_element_type=jnp.float32) + b
        skip_act = (i == num_layers - 1) and no_final_act and (num_layers >= 2)
        if not skip_act:
            h = jnp.maximum(h, 0.0)                  # activation = nn.ReLU
    o_ref[...] = h.astype(o_ref.dtype)


# ------------------------ deterministic parameter init ----------------------

def orthogonal_init(key, out_dim, in_dim, gain):
    """Orthogonal init matching torch.nn.init.orthogonal_ semantics."""
    rows, cols = out_dim, in_dim
    flat = jax.random.normal(key, (max(rows, cols), min(rows, cols)), jnp.float32)
    q, r = jnp.linalg.qr(flat)
    q = q * jnp.sign(jnp.diagonal(r))                # make decomposition unique
    if rows < cols:
        q = q.T
    return (gain * q[:rows, :cols]).astype(jnp.float32)


def make_mlp_params(key, num_layers, observation_dim, hidden_dim, proj_dim):
    """Replicates MLPBackbone.__init__ shapes with layer_init(std=sqrt(2), bias=0).

    Weights are returned pre-transposed as (in_dim, out_dim) and biases as
    (1, out_dim) so the forward pass does no transpose/reshape work.
    """
    gain = float(jnp.sqrt(2.0))
    dims = [observation_dim, hidden_dim]
    for i in range(num_layers - 1):
        dims.append(proj_dim if i == num_layers - 2 else hidden_dim)
    params = []
    keys = jax.random.split(key, len(dims) - 1)
    for k, d_in, d_out in zip(keys, dims[:-1], dims[1:]):
        w = orthogonal_init(k, d_out, d_in, gain)    # PyTorch Linear weight: (out, in)
        params.append((w.T, jnp.zeros((1, d_out), jnp.float32)))  # store (in, out), (1, out)
    return params


# ------------------------------ forward pass --------------------------------

@partial(jax.jit, static_argnames=("no_final_act",))
def mlp_backbone_forward(x, params, *, no_final_act):
    """Pallas implementation of MLPBackbone.forward — one fused kernel call."""
    bsz, obs_dim = x.shape
    n = len(params)
    out_dim = params[-1][0].shape[1]

    # Pad batch (sublane axis) up to a multiple of 8; slice back at the end.
    bsz_pad = ((bsz + 7) // 8) * 8
    if bsz_pad != bsz:
        x_in = jnp.zeros((bsz_pad, obs_dim), x.dtype).at[:bsz].set(x)
    else:
        x_in = x

    flat_args = [x_in]
    in_specs = [pl.BlockSpec((bsz_pad, obs_dim), lambda: (0, 0))]
    for w_t, b in params:
        flat_args.append(w_t)
        flat_args.append(b)
        in_specs.append(pl.BlockSpec(w_t.shape, lambda: (0, 0)))
        in_specs.append(pl.BlockSpec(b.shape, lambda: (0, 0)))

    out = pl.pallas_call(
        partial(_fused_mlp_kernel, num_layers=n, no_final_act=no_final_act),
        out_shape=jax.ShapeDtypeStruct((bsz_pad, out_dim), jnp.float32),
        in_specs=in_specs,
        out_specs=pl.BlockSpec((bsz_pad, out_dim), lambda: (0, 0)),
    )(*flat_args)
    return out[:bsz]


def mlp_backbone_reference(x, params, *, no_final_act):
    n = len(params)
    h = x
    for i, (w_t, b) in enumerate(params):
        h = h @ w_t + b
        if not (i == n - 1 and no_final_act and n >= 2):
            h = jnp.maximum(h, 0.0)
    return h


# ----------------------------------- main ------------------------------------

if __name__ == "__main__":
    num_layers = 3
    observation_dim = 16
    hidden_dim = 32
    proj_dim = 8
    no_final_act = True
    batch = 4

    key = jax.random.PRNGKey(0)
    k_param, k_x = jax.random.split(key)

    params = make_mlp_params(k_param, num_layers, observation_dim, hidden_dim, proj_dim)
    x = jax.random.normal(k_x, (batch, observation_dim), jnp.float32)

    out = mlp_backbone_forward(x, params, no_final_act=no_final_act)
    out = jax.block_until_ready(out)

    ref = mlp_backbone_reference(x, params, no_final_act=no_final_act)
    assert out.shape == (batch, proj_dim), out.shape
    assert jnp.allclose(out, ref, atol=1e-5, rtol=1e-5), "mismatch vs reference"

    print("KERNEL_OK")
</pallas_src>

<mosaic_0001>
module attributes {stable_mosaic.version = 11 : i64} {
  func.func @_fused_mlp_kernel(%arg0: memref<8x16xf32, #tpu.memory_space<vmem>>, %arg1: memref<16x32xf32, #tpu.memory_space<vmem>>, %arg2: memref<1x32xf32, #tpu.memory_space<vmem>>, %arg3: memref<32x32xf32, #tpu.memory_space<vmem>>, %arg4: memref<1x32xf32, #tpu.memory_space<vmem>>, %arg5: memref<32x8xf32, #tpu.memory_space<vmem>>, %arg6: memref<1x8xf32, #tpu.memory_space<vmem>>, %arg7: memref<8x8xf32, #tpu.memory_space<vmem>>) attributes {dimension_semantics = [], scalar_prefetch = 0 : i64, scratch_operands = 0 : i64, tpu.core_type = #tpu.core_type<tc>} {
    %c0 = arith.constant 0 : index
    %c0_0 = arith.constant 0 : index
    %0 = vector.load %arg0[%c0, %c0_0] : memref<8x16xf32, #tpu.memory_space<vmem>>, vector<8x16xf32>
    %c0_1 = arith.constant 0 : index
    %c0_2 = arith.constant 0 : index
    %1 = vector.load %arg1[%c0_1, %c0_2] : memref<16x32xf32, #tpu.memory_space<vmem>>, vector<16x32xf32>
    %c0_3 = arith.constant 0 : index
    %c0_4 = arith.constant 0 : index
    %2 = vector.load %arg2[%c0_3, %c0_4] : memref<1x32xf32, #tpu.memory_space<vmem>>, vector<1x32xf32>
    %cst = arith.constant dense<0.000000e+00> : vector<8x32xf32>
    %3 = tpu.matmul %0, %1, %cst {dimension_numbers = #tpu.dot_dimension_numbers<[1], [0], [0], [1], [0, 0, 1, 1], [], []>} : vector<8x16xf32>, vector<16x32xf32>, vector<8x32xf32> -> vector<8x32xf32>
    %4 = vector.broadcast %2 : vector<1x32xf32> to vector<8x32xf32>
    %5 = arith.addf %3, %4 : vector<8x32xf32>
    %cst_5 = arith.constant 0.000000e+00 : f32
    %6 = vector.broadcast %cst_5 : f32 to vector<8x32xf32>
    %7 = arith.maximumf %5, %6 : vector<8x32xf32>
    %c0_6 = arith.constant 0 : index
    %c0_7 = arith.constant 0 : index
    %8 = vector.load %arg3[%c0_6, %c0_7] : memref<32x32xf32, #tpu.memory_space<vmem>>, vector<32x32xf32>
    %c0_8 = arith.constant 0 : index
    %c0_9 = arith.constant 0 : index
    %9 = vector.load %arg4[%c0_8, %c0_9] : memref<1x32xf32, #tpu.memory_space<vmem>>, vector<1x32xf32>
    %cst_10 = arith.constant dense<0.000000e+00> : vector<8x32xf32>
    %10 = tpu.matmul %7, %8, %cst_10 {dimension_numbers = #tpu.dot_dimension_numbers<[1], [0], [0], [1], [0, 0, 1, 1], [], []>} : vector<8x32xf32>, vector<32x32xf32>, vector<8x32xf32> -> vector<8x32xf32>
    %11 = vector.broadcast %9 : vector<1x32xf32> to vector<8x32xf32>
    %12 = arith.addf %10, %11 : vector<8x32xf32>
    %cst_11 = arith.constant 0.000000e+00 : f32
    %13 = vector.broadcast %cst_11 : f32 to vector<8x32xf32>
    %14 = arith.maximumf %12, %13 : vector<8x32xf32>
    %c0_12 = arith.constant 0 : index
    %c0_13 = arith.constant 0 : index
    %15 = vector.load %arg5[%c0_12, %c0_13] : memref<32x8xf32, #tpu.memory_space<vmem>>, vector<32x8xf32>
    %c0_14 = arith.constant 0 : index
    %c0_15 = arith.constant 0 : index
    %16 = vector.load %arg6[%c0_14, %c0_15] : memref<1x8xf32, #tpu.memory_space<vmem>>, vector<1x8xf32>
    %cst_16 = arith.constant dense<0.000000e+00> : vector<8x8xf32>
    %17 = tpu.matmul %14, %15, %cst_16 {dimension_numbers = #tpu.dot_dimension_numbers<[1], [0], [0], [1], [0, 0, 1, 1], [], []>} : vector<8x32xf32>, vector<32x8xf32>, vector<8x8xf32> -> vector<8x8xf32>
    %18 = vector.broadcast %16 : vector<1x8xf32> to vector<8x8xf32>
    %19 = arith.addf %17, %18 : vector<8x8xf32>
    %c0_17 = arith.constant 0 : index
    %c0_18 = arith.constant 0 : index
    %20 = vector.load %arg7[%c0_17, %c0_18] : memref<8x8xf32, #tpu.memory_space<vmem>>, vector<8x8xf32>
    tpu.vector_store %arg7[%c0_17, %c0_18], %19 {strides = array<i32>} : memref<8x8xf32, #tpu.memory_space<vmem>>, vector<8x8xf32>,
    return
  }
}

</mosaic_0001>

<bundles_post_ra>
// kernel: mlp_backbone_forward.1
= control target key start
LH: loop header
LB: loop body
LE: loop exit
PB: predicated region body
PF: predicated region fallthrough
CT: control target
= control target key end

     0   :  { %v337_v0 = vmov 0.0   ;;  %vm338_vm0 = vmmov 0   ;;  %vm36_vm1 = vcmask 130048   ;;  %vm122_vm2 = vcmask 261120   ;;  %s426_s1 = inlined_call_operand.vmem [shape: f32[16,32], index: 1, kind: input, shape index: {}]   ;;  %s427_s0 = inlined_call_operand.vmem [shape: f32[8,16], index: 0, kind: input, shape index: {}]   ;;  %s428_s3 = inlined_call_operand.vmem [shape: f32[32,32], index: 3, kind: input, shape index: {}]   ;;  %s429_s5 = inlined_call_operand.vmem [shape: f32[32,8], index: 5, kind: input, shape index: {}]   ;;  %s430_s2 = inlined_call_operand.vmem [shape: f32[1,32], index: 2, kind: input, shape index: {}]   ;;  %s431_s4 = inlined_call_operand.vmem [shape: f32[1,32], index: 4, kind: input, shape index: {}]   ;;  %s432_s6 = inlined_call_operand.vmem [shape: f32[1,8], index: 6, kind: input, shape index: {}]   ;;  %s433_s7 = inlined_call_operand.vmem [shape: f32[8,8], index: 7, kind: output, shape index: {}]  }
   0x1   :  { %306 = vmatprep.subr.mxu0 %v337_v0  ;;  %v28_v1 = vld [vmem:[%s426_s1 + $0x8] sm:$0xff]  ;;  %v27_v2 = vld [vmem:[%s426_s1] sm:$0xff]  ;;  %310 = vmatprep.mubr.msk.f32.mxu0 %vm338_vm0, %v337_v0  ;;  %v114_v4 = vld [vmem:[%s428_s3 + $0x18] sm:$0xff]  ;;  %vm281_vm3 = vcmask 64512  }
   0x2   :  { %307 = vmatpush3.msra.mxu0 %v28_v1  ;;  %v26_v3 = vld [vmem:[%s427_s0] sm:$0xff]  ;;  %313 = vmatprep.subr.mxu1 %v337_v0  ;;  %v113_v5 = vld [vmem:[%s428_s3 + $0x10] sm:$0xff]  ;;  %v112_v6 = vld [vmem:[%s428_s3 + $0x8] sm:$0xff] }
   0x3   :  { %308 = vmatprep.subr.mxu0 %v337_v0  ;;  %314 = vmatpush3.msra.mxu1 %v114_v4  ;;  %v111_v7 = vld [vmem:[%s428_s3] sm:$0xff]  ;;  %v200_v8 = vld [vmem:[%s429_s5 + $0x18] sm:$0xff]  ;;  %v199_v14 = vld [vmem:[%s429_s5 + $0x10] sm:$0xff] }
   0x4   :  { %309 = vmatpush3.msra.mxu0 %v27_v2  ;;  %315 = vmatprep.subr.mxu1 %v337_v0  ;;  %v287_v9 = vld [vmem:[%s430_s2] ss:$0 sm:$0xff]  ;;  %v198_v15 = vld [vmem:[%s429_s5 + $0x8] sm:$0xff] }
   0x5   :  { %311 = vmatmul.mubr.msk.f32.vlgmr.msra.gmra.mxu0 %vm36_vm1, %v26_v3  ;;  %321 = vmatprep.mubr.msk.f32.mxu1 %vm338_vm0, %v337_v0  ;;  %v197_v16 = vld [vmem:[%s429_s5] sm:$0xff] }
   0x6   :  { %324 = vmatprep.subr.mxu0 %v337_v0  ;;  %332 = vmatprep.mubr.msk.f32.mxu0 %vm338_vm0, %v337_v0  ;;  %v289_v17 = vld [vmem:[%s431_s4] ss:$0 sm:$0xff] }
   0x7   :  { %316 = vmatpush3.msra.mxu1 %v113_v5  ;;  %325 = vmatpush3.msra.mxu0 %v200_v8  ;;  %v291_v22 = vld [vmem:[%s432_s6] ss:$0 sm:$0xff] }
   0x8   :  { %317 = vmatprep.subr.mxu1 %v337_v0  ;;  %326 = vmatprep.subr.mxu0 %v337_v0 }
   0x9   :  { %318 = vmatpush3.msra.mxu1 %v112_v6  ;;  %327 = vmatpush3.msra.mxu0 %v199_v14 }
   0xa   :  { %319 = vmatprep.subr.mxu1 %v337_v0  ;;  %328 = vmatprep.subr.mxu0 %v337_v0 }
   0xb   :  { %320 = vmatpush3.msra.mxu1 %v111_v7  ;;  %329 = vmatpush3.msra.mxu0 %v198_v15 }
   0xc   :  { %330 = vmatprep.subr.mxu0 %v337_v0 }
   0xd   :  { %331 = vmatpush3.msra.mxu0 %v197_v16 }
  0xc5   :  { %v106_v10 = vpop.f32.mrf.mxu0 }
  0xc6   :  { %v107_v11 = vadd.f32 %v287_v9, %v106_v10 }
  0xc7   :  { %v312_v12 = vpop.f32.mrf.mxu0 }
  0xc8   :  { %v110_v13 = vmax.f32 %v107_v11, 0.0 }
  0xca   :  { %322 = vmatmul.mubr.msk.f32.vlgmr.msra.gmra.mxu1 %vm122_vm2, %v110_v13 }
 0x18a   :  { %v192_v18 = vpop.f32.mrf.mxu1 }
 0x18b   :  { %v193_v19 = vadd.f32 %v289_v17, %v192_v18 }
 0x18c   :  { %v323_v20 = vpop.f32.mrf.mxu1 }
 0x18d   :  { %v196_v21 = vmax.f32 %v193_v19, 0.0 }
 0x18f   :  { %333 = vmatmul.mubr.msk.f32.vlgmr.msra.gmra.mxu0 %vm122_vm2, %v196_v21 }
 0x24f   :  { %v277_v23 = vpop.f32.mrf.mxu0 }
 0x250   :  { %v278_v24 = vadd.f32 %v291_v22, %v277_v23 }
 0x251   :  { %v334_v25 = vpop.f32.mrf.mxu0 }
 0x252   :  { %282 = vst.msk [vmem:[%s433_s7] sm:$0xff] %vm281_vm3, %v278_v24 }

</bundles_post_ra>
